<compile_context>
chip_gen: v5e
topology: v5e:2x2
jax: 0.10.0
libtpu: 0.0.40
codegen_flags: <defaults>
</compile_context>

<pallas_src>
import functools

import jax
import jax.numpy as jnp
from jax import lax
from jax.experimental import pallas as pl
from jax.experimental.pallas import tpu as pltpu


def _round_up(a, b):
    return (a + b - 1) // b * b


def _mmd_kernel(x_ref, y_ref, out_ref, z_ref, gram_ref, *,
                sigma, n, m, n_pad, d_feat, mask_last, dot_precision):
    """One feature-chunk of the MMD computation (grid axis 0 walks D)."""
    k = pl.program_id(0)
    p_pad = z_ref.shape[0]

    @pl.when(k == 0)
    def _init():
        # Zero once: the gap rows [n, n_pad) and [n_pad+m, p_pad) stay zero
        # for the whole reduction; valid rows are overwritten every chunk.
        z_ref[...] = jnp.zeros_like(z_ref)
        gram_ref[...] = jnp.zeros_like(gram_ref)

    x = x_ref[...]                      # (n, tk), caller dtype (f32 / bf16)
    y = y_ref[...]                      # (m, tk)

    if mask_last:
        # The last chunk sticks past D: its out-of-bounds lanes hold
        # unspecified data, so *select* them to zero (multiply would keep NaN).
        tk = x_ref.shape[1]
        col = k * tk + lax.broadcasted_iota(jnp.int32, (1, tk), 1)
        valid = col < d_feat
        x = jnp.where(valid, x, 0)
        y = jnp.where(valid, y, 0)

    # Stage both operands into one slab and do a single fused Gram update.
    z_ref[0:n, :] = x.astype(z_ref.dtype)
    z_ref[n_pad:n_pad + m, :] = y.astype(z_ref.dtype)
    z = z_ref[...]
    dn = (((1,), (1,)), ((), ()))       # contract along the feature axis
    gram_ref[...] += lax.dot_general(z, z, dn, precision=dot_precision,
                                     preferred_element_type=jnp.float32)

    @pl.when(k == pl.num_programs(0) - 1)
    def _finalize():
        g = gram_ref[...]
        inv_s2 = jnp.float32(1.0 / (sigma * sigma))

        # Squared row norms = Gram diagonal (extracted once, reused for the
        # row- and column-broadcast vectors).
        ri = lax.broadcasted_iota(jnp.int32, (p_pad, p_pad), 0)
        ci = lax.broadcasted_iota(jnp.int32, (p_pad, p_pad), 1)
        gd = jnp.where(ri == ci, g, 0.0)
        nrm_col = jnp.sum(gd, axis=1, keepdims=True)        # (p_pad, 1)
        nrm_row = jnp.sum(gd, axis=0, keepdims=True)        # (1, p_pad)

        # Kill padded rows/cols by pushing their norms to a huge value so the
        # RBF kernel underflows to 0 (no full-size pad masks needed).
        r1 = lax.broadcasted_iota(jnp.int32, (p_pad, 1), 0)
        c1 = lax.broadcasted_iota(jnp.int32, (1, p_pad), 1)
        big = jnp.float32(1e30)
        valid_r = (r1 < n) | ((r1 >= n_pad) & (r1 < n_pad + m))
        valid_c = (c1 < n) | ((c1 >= n_pad) & (c1 < n_pad + m))
        nrm_col = jnp.where(valid_r, nrm_col, big)
        nrm_row = jnp.where(valid_c, nrm_row, big)

        k_all = nrm_col + nrm_row - 2.0 * g
        e = jnp.exp(-k_all * inv_s2)

        # Quadrant weights of the fused (x;y) Gram.  Each off-diagonal block
        # equals k_xy (one transposed), so weighting both by -1/(N*M) gives
        # the torch -2/(N*M) * sum(exp(-k_xy/sigma^2)) term.
        a = 1.0 / (n * (n - 1)) if n > 1 else 0.0    # static python branches,
        b = 1.0 / (m * (m - 1)) if m > 1 else 0.0    # mirror torch's N==1/M==1
        c = -1.0 / (n * m)
        in_x_r = r1 < n_pad
        in_x_c = c1 < n_pad
        w = jnp.where(in_x_r & in_x_c, jnp.float32(a),
                      jnp.where((~in_x_r) & (~in_x_c), jnp.float32(b),
                                jnp.float32(c)))

        # diag(k_xx)=diag(k_yy)=0 exactly (norms come from the Gram diagonal
        # itself), so torch's diagonal exclusion is exactly a*N + b*M.
        mmd = jnp.sum(e * w) - jnp.float32(a * n + b * m)
        out_ref[...] = jnp.reshape(mmd, (1, 1))


def mmd_loss(inputs, samples, sigma, *, precision=None, max_tk=None):
    """JAX/Pallas equivalent of MMDLoss(sigma)(inputs, samples) (forward)."""
    n = inputs.shape[0]
    if inputs.ndim == samples.ndim:
        x = inputs.reshape(n, -1)
        y = samples.reshape(samples.shape[0], -1)
    elif inputs.ndim + 1 == samples.ndim:
        m0, s_per = samples.shape[0], samples.shape[1]
        x = inputs.reshape(n, -1)
        y = samples.reshape(m0 * s_per, -1)
    else:
        raise NotImplementedError
    m = y.shape[0]
    d = x.shape[1]
    assert y.shape[1] == d, "feature dims of inputs and samples must match"

    # Keep narrow float dtypes (bf16/f16) through the DMA and the MXU; only
    # promote non-float inputs.  Both operands must share a dtype.
    if not jnp.issubdtype(x.dtype, jnp.floating):
        x = x.astype(jnp.float32)
    if y.dtype != x.dtype:
        y = y.astype(x.dtype)

    itemsize = jnp.dtype(x.dtype).itemsize
    sub = {4: 8, 2: 16, 1: 32}.get(itemsize, 8)     # sublane packing multiple
    lane = 128
    n_pad = _round_up(n, sub)
    m_pad = _round_up(m, sub)
    p_pad = n_pad + m_pad                            # fused slab row count

    # Generation-aware VMEM budget (v5e/v6e: 128 MiB physical -> ~96 MiB
    # limit; v7x: 64 MiB physical -> ~48 MiB limit).
    try:
        info = pltpu.get_tpu_info()
        vmem_cap = int(getattr(info, "vmem_capacity_bytes", 64 * 1024 * 1024))
    except Exception:
        vmem_cap = 64 * 1024 * 1024
    vmem_limit = max(32 * 1024 * 1024,
                     min(vmem_cap * 3 // 4, 96 * 1024 * 1024))

    gram_bytes = p_pad * _round_up(p_pad, lane) * 4
    # Per feature column: 2x double-buffered inputs + the fused z slab.
    per_col = (2 * (n_pad + m_pad) + p_pad) * itemsize
    budget = vmem_limit - gram_bytes - 2 * 1024 * 1024       # headroom
    tk = lane
    for cand in (8192, 4096, 2048, 1024, 512, 256, 128):
        if cand * per_col <= budget:
            tk = cand
            break
    tk = max(lane, min(tk, _round_up(d, lane)))
    if max_tk is not None:
        tk = max(lane, min(tk, _round_up(max_tk, lane)))
    num_chunks = (d + tk - 1) // tk
    mask_last = (d % tk) != 0
    # TODO(synk): for very large N*M the (p_pad, p_pad) Gram scratch should be
    # output-tiled (and xx/yy symmetry exploited) instead of held whole in
    # VMEM, and on v7x the D-reduction could be split across the two
    # TensorCores (leading size-2 "parallel" axis + tiny combine epilogue).

    if precision is None:
        if x.dtype == jnp.float32:
            # Small Gram => HBM-bound, HIGHEST is free; large Gram => MXU-
            # bound, HIGH (3-pass) is plenty for a loss scalar.
            precision = (lax.Precision.HIGHEST if p_pad <= 512
                         else lax.Precision.HIGH)
        else:
            precision = lax.Precision.DEFAULT

    kernel = functools.partial(
        _mmd_kernel, sigma=float(sigma), n=int(n), m=int(m), n_pad=int(n_pad),
        d_feat=int(d), mask_last=bool(mask_last), dot_precision=precision)

    out = pl.pallas_call(
        kernel,
        out_shape=jax.ShapeDtypeStruct((1, 1), jnp.float32),
        grid=(num_chunks,),
        in_specs=[
            pl.BlockSpec((n, tk), lambda k: (0, k)),   # full-row blocks: no pad
            pl.BlockSpec((m, tk), lambda k: (0, k)),
        ],
        out_specs=pl.BlockSpec((1, 1), lambda k: (0, 0)),
        scratch_shapes=[
            pltpu.VMEM((p_pad, tk), x.dtype),          # fused (x;y) slab
            pltpu.VMEM((p_pad, p_pad), jnp.float32),   # fused Gram accumulator
        ],
        compiler_params=pltpu.CompilerParams(
            dimension_semantics=("arbitrary",),        # reduction over D
            vmem_limit_bytes=int(vmem_limit),
        ),
    )(x, y)
    return out[0, 0]


def _mmd_ref(inputs, samples, sigma):
    """Pure-jnp reference (mirrors the PyTorch forward)."""
    n = inputs.shape[0]
    if inputs.ndim == samples.ndim:
        x = inputs.reshape(n, -1)
        y = samples.reshape(samples.shape[0], -1)
    else:
        y = samples.reshape(samples.shape[0] * samples.shape[1], -1)
        x = inputs.reshape(n, -1)
    m = y.shape[0]
    x = x.astype(jnp.float32)
    y = y.astype(jnp.float32)

    def kmat(a, b):
        prod = jnp.matmul(a, b.T, precision=lax.Precision.HIGHEST)
        return (jnp.sum(a * a, 1)[:, None] + jnp.sum(b * b, 1)[None, :]
                - 2.0 * prod)

    s2 = sigma * sigma
    kxx, kyy, kxy = kmat(x, x), kmat(y, y), kmat(x, y)
    mmd = 0.0
    if n > 1:
        mmd += (jnp.sum(jnp.exp(-kxx / s2))
                - jnp.sum(jnp.exp(-jnp.diag(kxx) / s2))) / (n * (n - 1))
    if m > 1:
        mmd += (jnp.sum(jnp.exp(-kyy / s2))
                - jnp.sum(jnp.exp(-jnp.diag(kyy) / s2))) / (m * (m - 1))
    mmd += -2.0 / (n * m) * jnp.sum(jnp.exp(-kxy / s2))
    return jnp.float32(mmd)


if __name__ == "__main__":
    key = jax.random.PRNGKey(0)
    k1, k2, k3, k4, k5 = jax.random.split(key, 5)

    sigma = 2.0
    # Scale so pairwise distances are O(sigma^2) and the RBF values are
    # non-trivial (exercises the exp/reduction path, not just exp(-huge)=0).
    scale = 0.05

    # Case 1: same-rank inputs / samples (NCHW), batch=2 vs batch=4.
    x = scale * jax.random.normal(k1, (2, 4, 16, 16), dtype=jnp.float32)
    y = scale * jax.random.normal(k2, (4, 4, 16, 16), dtype=jnp.float32)
    out1 = mmd_loss(x, y, sigma)
    jax.block_until_ready(out1)

    # Case 2: samples with an extra "samples-per-input" dimension.
    y2 = scale * jax.random.normal(k3, (2, 3, 4, 16, 16), dtype=jnp.float32)
    out2 = mmd_loss(x, y2, sigma)
    jax.block_until_ready(out2)

    # Case 3: bf16 inputs stay bf16 through the DMA and the MXU.
    out3 = mmd_loss(x.astype(jnp.bfloat16), y.astype(jnp.bfloat16), sigma)
    jax.block_until_ready(out3)

    # Case 4: ragged feature dim + forced multi-chunk reduction (exercises the
    # in-kernel column mask and the cross-chunk Gram accumulation).
    x4 = scale * jax.random.normal(k4, (3, 5, 9, 9), dtype=jnp.float32)
    y4 = scale * jax.random.normal(k5, (5, 5, 9, 9), dtype=jnp.float32)
    out4 = mmd_loss(x4, y4, sigma, max_tk=128)
    jax.block_until_ready(out4)

    # Sanity checks vs. pure-jnp reference.
    ref1 = _mmd_ref(x, y, sigma)
    ref2 = _mmd_ref(x, y2, sigma)
    ref3 = _mmd_ref(x.astype(jnp.bfloat16), y.astype(jnp.bfloat16), sigma)
    ref4 = _mmd_ref(x4, y4, sigma)
    assert jnp.allclose(out1, ref1, atol=1e-4, rtol=1e-4), (out1, ref1)
    assert jnp.allclose(out2, ref2, atol=1e-4, rtol=1e-4), (out2, ref2)
    assert jnp.allclose(out3, ref3, atol=1e-3, rtol=1e-3), (out3, ref3)
    assert jnp.allclose(out4, ref4, atol=1e-4, rtol=1e-4), (out4, ref4)

    print("KERNEL_OK")
</pallas_src>

<mosaic_0001>
module attributes {stable_mosaic.version = 11 : i64} {
  func.func @_mmd_kernel(%arg0: i32, %arg1: memref<2x1024xf32, #tpu.memory_space<vmem>>, %arg2: memref<4x1024xf32, #tpu.memory_space<vmem>>, %arg3: memref<1x1xf32, #tpu.memory_space<vmem>>, %arg4: memref<16x1024xf32, #tpu.memory_space<vmem>>, %arg5: memref<16x16xf32, #tpu.memory_space<vmem>>) attributes {dimension_semantics = [#tpu.dimension_semantics<arbitrary>], iteration_bounds = array<i64: 1>, scalar_prefetch = 0 : i64, scratch_operands = 2 : i64, tpu.core_type = #tpu.core_type<tc>, window_params = [{transform_indices = @transform_0, window_bounds = array<i64: 2, 1024>}, {transform_indices = @transform_1, window_bounds = array<i64: 4, 1024>}, {pipeline_mode = #tpu.pipeline_mode<synchronous>, transform_indices = @transform_2, window_bounds = array<i64: 1, 1>}]} {
    %c0_i32 = arith.constant 0 : i32
    %0 = arith.cmpi eq, %arg0, %c0_i32 : i32
    %1 = arith.extui %0 : i1 to i32
    %c0_i32_0 = arith.constant 0 : i32
    %2 = arith.cmpi ne, %1, %c0_i32_0 : i32
    scf.if %2 {
      %cst_15 = arith.constant 0.000000e+00 : f32
      %15 = vector.broadcast %cst_15 : f32 to vector<16x1024xf32>
      %c0_16 = arith.constant 0 : index
      %c0_17 = arith.constant 0 : index
      %16 = vector.load %arg4[%c0_16, %c0_17] : memref<16x1024xf32, #tpu.memory_space<vmem>>, vector<16x1024xf32>
      tpu.vector_store %arg4[%c0_16, %c0_17], %15 {strides = array<i32>} : memref<16x1024xf32, #tpu.memory_space<vmem>>, vector<16x1024xf32>,
      %cst_18 = arith.constant 0.000000e+00 : f32
      %17 = vector.broadcast %cst_18 : f32 to vector<16x16xf32>
      %c0_19 = arith.constant 0 : index
      %c0_20 = arith.constant 0 : index
      %18 = vector.load %arg5[%c0_19, %c0_20] : memref<16x16xf32, #tpu.memory_space<vmem>>, vector<16x16xf32>
      tpu.vector_store %arg5[%c0_19, %c0_20], %17 {strides = array<i32>} : memref<16x16xf32, #tpu.memory_space<vmem>>, vector<16x16xf32>,
    } else {
    }
    %c0 = arith.constant 0 : index
    %c0_1 = arith.constant 0 : index
    %3 = vector.load %arg1[%c0, %c0_1] : memref<2x1024xf32, #tpu.memory_space<vmem>>, vector<2x1024xf32>
    %c0_2 = arith.constant 0 : index
    %c0_3 = arith.constant 0 : index
    %4 = vector.load %arg2[%c0_2, %c0_3] : memref<4x1024xf32, #tpu.memory_space<vmem>>, vector<4x1024xf32>
    %c0_4 = arith.constant 0 : index
    %c0_5 = arith.constant 0 : index
    %5 = vector.load %arg4[%c0_4, %c0_5] : memref<16x1024xf32, #tpu.memory_space<vmem>>, vector<2x1024xf32>
    tpu.vector_store %arg4[%c0_4, %c0_5], %3 {strides = array<i32>} : memref<16x1024xf32, #tpu.memory_space<vmem>>, vector<2x1024xf32>,
    %c8 = arith.constant 8 : index
    %c0_6 = arith.constant 0 : index
    %6 = vector.load %arg4[%c8, %c0_6] : memref<16x1024xf32, #tpu.memory_space<vmem>>, vector<4x1024xf32>
    tpu.vector_store %arg4[%c8, %c0_6], %4 {strides = array<i32>} : memref<16x1024xf32, #tpu.memory_space<vmem>>, vector<4x1024xf32>,
    %c0_7 = arith.constant 0 : index
    %c0_8 = arith.constant 0 : index
    %7 = vector.load %arg4[%c0_7, %c0_8] : memref<16x1024xf32, #tpu.memory_space<vmem>>, vector<16x1024xf32>
    %c0_9 = arith.constant 0 : index
    %c0_10 = arith.constant 0 : index
    %8 = vector.load %arg5[%c0_9, %c0_10] : memref<16x16xf32, #tpu.memory_space<vmem>>, vector<16x16xf32>
    %cst = arith.constant dense<0.000000e+00> : vector<16x16xf32>
    %9 = tpu.matmul %7, %7, %cst {dimension_numbers = #tpu.dot_dimension_numbers<[1], [1], [0], [0], [0, 0, 1, 0], [], []>, precision = #tpu.contract_precision<fp32>} : vector<16x1024xf32>, vector<16x1024xf32>, vector<16x16xf32> -> vector<16x16xf32>
    %10 = arith.addf %8, %9 : vector<16x16xf32>
    %c0_11 = arith.constant 0 : index
    %c0_12 = arith.constant 0 : index
    %11 = vector.load %arg5[%c0_11, %c0_12] : memref<16x16xf32, #tpu.memory_space<vmem>>, vector<16x16xf32>
    tpu.vector_store %arg5[%c0_11, %c0_12], %10 {strides = array<i32>} : memref<16x16xf32, #tpu.memory_space<vmem>>, vector<16x16xf32>,
    %c0_i32_13 = arith.constant 0 : i32
    %12 = arith.cmpi eq, %arg0, %c0_i32_13 : i32
    %13 = arith.extui %12 : i1 to i32
    %c0_i32_14 = arith.constant 0 : i32
    %14 = arith.cmpi ne, %13, %c0_i32_14 : i32
    scf.if %14 {
      %c0_15 = arith.constant 0 : index
      %c0_16 = arith.constant 0 : index
      %15 = vector.load %arg5[%c0_15, %c0_16] : memref<16x16xf32, #tpu.memory_space<vmem>>, vector<16x16xf32>
      %16 = tpu.iota {dimensions = array<i32: 0>} : vector<16x16xi32>
      %17 = tpu.iota {dimensions = array<i32: 1>} : vector<16x16xi32>
      %18 = arith.cmpi eq, %16, %17 : vector<16x16xi32>
      %cst_17 = arith.constant 0.000000e+00 : f32
      %19 = vector.broadcast %cst_17 : f32 to vector<16x16xf32>
      %20 = arith.select %18, %15, %19 : vector<16x16xi1>, vector<16x16xf32>
      %cst_18 = arith.constant dense<0.000000e+00> : vector<16xf32>
      %21 = vector.multi_reduction <add>, %20, %cst_18 [1] : vector<16x16xf32> to vector<16xf32>
      %22 = vector.shape_cast %21 : vector<16xf32> to vector<16x1xf32>
      %cst_19 = arith.constant dense<0.000000e+00> : vector<16xf32>
      %23 = vector.multi_reduction <add>, %20, %cst_19 [0] : vector<16x16xf32> to vector<16xf32>
      %24 = vector.shape_cast %23 : vector<16xf32> to vector<1x16xf32>
      %25 = tpu.iota {dimensions = array<i32: 0>} : vector<16x1xi32>
      %26 = tpu.iota {dimensions = array<i32: 1>} : vector<1x16xi32>
      %c2_i32 = arith.constant 2 : i32
      %27 = vector.broadcast %c2_i32 : i32 to vector<16x1xi32>
      %28 = arith.cmpi slt, %25, %27 : vector<16x1xi32>
      %c8_i32 = arith.constant 8 : i32
      %29 = vector.broadcast %c8_i32 : i32 to vector<16x1xi32>
      %30 = arith.cmpi sge, %25, %29 : vector<16x1xi32>
      %c12_i32 = arith.constant 12 : i32
      %31 = vector.broadcast %c12_i32 : i32 to vector<16x1xi32>
      %32 = arith.cmpi slt, %25, %31 : vector<16x1xi32>
      %33 = arith.andi %30, %32 : vector<16x1xi1>
      %34 = arith.ori %28, %33 : vector<16x1xi1>
      %c2_i32_20 = arith.constant 2 : i32
      %35 = vector.broadcast %c2_i32_20 : i32 to vector<1x16xi32>
      %36 = arith.cmpi slt, %26, %35 : vector<1x16xi32>
      %c8_i32_21 = arith.constant 8 : i32
      %37 = vector.broadcast %c8_i32_21 : i32 to vector<1x16xi32>
      %38 = arith.cmpi sge, %26, %37 : vector<1x16xi32>
      %c12_i32_22 = arith.constant 12 : i32
      %39 = vector.broadcast %c12_i32_22 : i32 to vector<1x16xi32>
      %40 = arith.cmpi slt, %26, %39 : vector<1x16xi32>
      %41 = arith.andi %38, %40 : vector<1x16xi1>
      %42 = arith.ori %36, %41 : vector<1x16xi1>
      %cst_23 = arith.constant 1.000000e+30 : f32
      %43 = vector.broadcast %cst_23 : f32 to vector<16x1xf32>
      %44 = arith.select %34, %22, %43 : vector<16x1xi1>, vector<16x1xf32>
      %cst_24 = arith.constant 1.000000e+30 : f32
      %45 = vector.broadcast %cst_24 : f32 to vector<1x16xf32>
      %46 = arith.select %42, %24, %45 : vector<1x16xi1>, vector<1x16xf32>
      %47 = vector.broadcast %44 : vector<16x1xf32> to vector<16x16xf32>
      %48 = vector.broadcast %46 : vector<1x16xf32> to vector<16x16xf32>
      %49 = arith.addf %47, %48 : vector<16x16xf32>
      %cst_25 = arith.constant 2.000000e+00 : f32
      %50 = vector.broadcast %cst_25 : f32 to vector<16x16xf32>
      %51 = arith.mulf %50, %15 : vector<16x16xf32>
      %52 = arith.subf %49, %51 : vector<16x16xf32>
      %cst_26 = arith.constant 0.000000e+00 : f32
      %53 = vector.broadcast %cst_26 : f32 to vector<16x16xf32>
      %54 = arith.subf %53, %52 : vector<16x16xf32>
      %cst_27 = arith.constant 2.500000e-01 : f32
      %55 = vector.broadcast %cst_27 : f32 to vector<16x16xf32>
      %56 = arith.mulf %54, %55 : vector<16x16xf32>
      %57 = math.exp %56 : vector<16x16xf32>
      %c8_i32_28 = arith.constant 8 : i32
      %58 = vector.broadcast %c8_i32_28 : i32 to vector<16x1xi32>
      %59 = arith.cmpi slt, %25, %58 : vector<16x1xi32>
      %c8_i32_29 = arith.constant 8 : i32
      %60 = vector.broadcast %c8_i32_29 : i32 to vector<1x16xi32>
      %61 = arith.cmpi slt, %26, %60 : vector<1x16xi32>
      %62 = vector.broadcast %59 : vector<16x1xi1> to vector<16x16xi1>
      %63 = vector.broadcast %61 : vector<1x16xi1> to vector<16x16xi1>
      %64 = arith.andi %62, %63 : vector<16x16xi1>
      %cst_30 = arith.constant dense<true> : vector<16x1xi1>
      %65 = arith.xori %59, %cst_30 : vector<16x1xi1>
      %cst_31 = arith.constant dense<true> : vector<1x16xi1>
      %66 = arith.xori %61, %cst_31 : vector<1x16xi1>
      %67 = vector.broadcast %65 : vector<16x1xi1> to vector<16x16xi1>
      %68 = vector.broadcast %66 : vector<1x16xi1> to vector<16x16xi1>
      %69 = arith.andi %67, %68 : vector<16x16xi1>
      %cst_32 = arith.constant 0.0833333358 : f32
      %cst_33 = arith.constant -1.250000e-01 : f32
      %70 = vector.broadcast %cst_32 : f32 to vector<16x16xf32>
      %71 = vector.broadcast %cst_33 : f32 to vector<16x16xf32>
      %72 = arith.select %69, %70, %71 : vector<16x16xi1>, vector<16x16xf32>
      %cst_34 = arith.constant 5.000000e-01 : f32
      %73 = vector.broadcast %cst_34 : f32 to vector<16x16xf32>
      %74 = arith.select %64, %73, %72 : vector<16x16xi1>, vector<16x16xf32>
      %75 = arith.mulf %57, %74 : vector<16x16xf32>
      %76 = vector.shape_cast %75 : vector<16x16xf32> to vector<1x16x16xf32>
      %cst_35 = arith.constant dense<0.000000e+00> : vector<1xf32>
      %77 = vector.multi_reduction <add>, %76, %cst_35 [1, 2] : vector<1x16x16xf32> to vector<1xf32>
      %78 = vector.shape_cast %77 : vector<1xf32> to vector<1x1x1xf32>
      %79 = vector.extract %78[0, 0, 0] : f32 from vector<1x1x1xf32>
      %cst_36 = arith.constant 1.33333337 : f32
      %80 = arith.subf %79, %cst_36 : f32
      %81 = vector.broadcast %80 : f32 to vector<1x1xf32>
      %c0_37 = arith.constant 0 : index
      %c0_38 = arith.constant 0 : index
      %82 = vector.load %arg3[%c0_37, %c0_38] : memref<1x1xf32, #tpu.memory_space<vmem>>, vector<1x1xf32>
      tpu.vector_store %arg3[%c0_37, %c0_38], %81 {strides = array<i32>} : memref<1x1xf32, #tpu.memory_space<vmem>>, vector<1x1xf32>,
    } else {
    }
    return
  }
  func.func @transform_0(%arg0: i32) -> (i32, i32) {
    %c0_i32 = arith.constant 0 : i32
    %c0_i32_0 = arith.constant 0 : i32
    return %c0_i32, %arg0 : i32, i32
  }
  func.func @transform_1(%arg0: i32) -> (i32, i32) {
    %c0_i32 = arith.constant 0 : i32
    %c0_i32_0 = arith.constant 0 : i32
    return %c0_i32, %arg0 : i32, i32
  }
  func.func @transform_2(%arg0: i32) -> (i32, i32) {
    %c0_i32 = arith.constant 0 : i32
    %c0_i32_0 = arith.constant 0 : i32
    %c0_i32_1 = arith.constant 0 : i32
    return %c0_i32, %c0_i32_0 : i32, i32
  }
}

</mosaic_0001>

<bundles_post_ra>
// kernel: tpu_custom_call.1
= control target key start
LH: loop header
LB: loop body
LE: loop exit
PB: predicated region body
PF: predicated region fallthrough
CT: control target
= control target key end

     0   :  { %7 = vsyncpa [#allocation5], 0  ;;  %s2237_s0 = inlined_call_operand.hbm [shape: f32[2,1024], index: 0, kind: input, shape index: {}]   ;;  %s2238_s1 = inlined_call_operand.hbm [shape: f32[4,1024], index: 1, kind: input, shape index: {}]   ;;  %s2239_s2 = inlined_call_operand.hbm [shape: f32[1,1], index: 2, kind: output, shape index: {}]  }
   0x1   :  { %8 = vsyncpa [#allocation8], 0 }
   0x2   :  { %9 = vsyncpa [#allocation6], 0  ;;  %s15_s11 = sshll.u32 %s2237_s0, 4  ;;  %s1888_s12 = smov [#allocation4]   ;;  %s16_s11 = int_to_ptr.hbm [resolvable:$true] %s15_s11 }
   0x3   :  { %s17_s13 = sshll.u32 %s1888_s12, 4  ;;  %s26_s16 = sshll.u32 %s2238_s1, 4  ;;  %s18_s13 = int_to_ptr.vmem [resolvable:$true] %s17_s13  ;;  %s27_s16 = int_to_ptr.hbm [resolvable:$true] %s26_s16 }
   0x4   :  { %20 = dma.hbm_to_vmem [thread:$0]  %s16_s11, 256, %s18_s13, [#allocation5]  }
   0x5   :  { %s1889_s17 = smov [#allocation7]  }
   0x6   :  { %s28_s18 = sshll.u32 %s1889_s17, 4  ;;  %s29_s18 = int_to_ptr.vmem [resolvable:$true] %s28_s18 }
   0x7   :  { %31 = dma.hbm_to_vmem [thread:$0]  %s27_s16, 512, %s29_s18, [#allocation8]  }
   0x8   :  { %1882 = dma.done.wait [#allocation5], 256  }
   0x9   :  { %1883 = vsyncadd [#allocation5], 4294967040 }
   0xa   :  { %1884 = dma.done.wait [#allocation8], 512  }
   0xb   :  { %1885 = vsyncadd [#allocation8], 4294966784  ;;  %v1890_v0 = vmov 0.0   ;;  %v63_v1 = vld [vmem:[#allocation4] sm:$0xff]  ;;  %v65_v2 = vld [vmem:[#allocation7] sm:$0xff]  ;;  %vm60_vm0 = vcmask 130048  }
   0xc   :  { %52 = vst [vmem:[#allocation2 + $0x40] sm:$0xff] %v1890_v0  ;;  %v66_v14 = vld [vmem:[#allocation7 + $0x8] sm:$0xff]  ;;  %v64_v58 = vld [vmem:[#allocation4 + $0x8] sm:$0xff]  ;;  %v67_v61 = vld [vmem:[#allocation7 + $0x10] sm:$0xff]  ;;  %vm1891_vm11 = vmmov 1   ;;  %s1893_s0 = smov [#allocation9]  }
   0xd   :  { %44 = vst [vmem:[#allocation2 + $0x30] sm:$0xff] %v1890_v0  ;;  %s1784_s1 = sshll.u32 %s1893_s0, 4  ;;  %s1786_s21 = sshll.u32 %s2239_s2, 4  ;;  %vm1777_vm13 = vcmask 0   ;;  %s1785_s1 = int_to_ptr.vmem [resolvable:$true] %s1784_s1  ;;  %s1787_s21 = int_to_ptr.hbm [resolvable:$true] %s1786_s21 }
   0xe   :  { %45 = vst [vmem:[#allocation2] sm:$0xff] %v1890_v0 }
   0xf   :  { %46 = vst [vmem:[#allocation2 + $0x58] sm:$0xff] %v1890_v0 }
  0x10   :  { %47 = vst [vmem:[#allocation2 + $0x18] sm:$0xff] %v1890_v0 }
  0x11   :  { %48 = vst [vmem:[#allocation2 + $0x50] sm:$0xff] %v1890_v0 }
  0x12   :  { %49 = vst [vmem:[#allocation2 + $0x68] sm:$0xff] %v1890_v0 }
  0x13   :  { %71 = vst [vmem:[#allocation1] ss:$4 sm:$0xff] %v63_v1 }
  0x14   :  { %50 = vst [vmem:[#allocation2 + $0x8] sm:$0xff] %v1890_v0 }
  0x15   :  { %51 = vst [vmem:[#allocation2 + $0x48] sm:$0xff] %v1890_v0 }
  0x16   :  { %53 = vst [vmem:[#allocation2 + $0x20] sm:$0xff] %v1890_v0 }
  0x17   :  { %54 = vst [vmem:[#allocation2 + $0x10] sm:$0xff] %v1890_v0 }
  0x18   :  { %55 = vst [vmem:[#allocation2 + $0x38] sm:$0xff] %v1890_v0 }
  0x19   :  { %56 = vst [vmem:[#allocation2 + $0x60] sm:$0xff] %v1890_v0 }
  0x1a   :  { %v74_v3 = vld.sshfl [vmem:[#allocation1] sm:$0xff pattern:$0x73625140]  ;;  %v75_v4 = vld.sshfl [vmem:[#allocation1 + $0x8] sm:$0xff pattern:$0x73625140] }
  0x1b   :  { %102 = vst [vmem:[#allocation1] ss:$2 sm:$0xff] %v65_v2  ;;  %v76_v15 = vld.sshfl [vmem:[#allocation1 + $0x10] sm:$0xff pattern:$0x73625140] }
  0x1c   :  { %57 = vst [vmem:[#allocation2 + $0x70] sm:$0xff] %v1890_v0  ;;  %v77_v19 = vld.sshfl [vmem:[#allocation1 + $0x18] sm:$0xff pattern:$0x73625140] }
  0x1d   :  { %58 = vst [vmem:[#allocation2 + $0x78] sm:$0xff] %v1890_v0 }
  0x1e   :  { %59 = vst [vmem:[#allocation2 + $0x28] sm:$0xff] %v1890_v0 }
  0x1f   :  { %90 = vst [vmem:[#allocation2 + $0x30] sm:$0x3] %v74_v3 }
  0x20   :  { %91 = vst [vmem:[#allocation2] sm:$0x3] %v75_v4 }
  0x21   :  { %104 = vst [vmem:[#allocation1 + $0x10] ss:$2 sm:$0xff] %v66_v14 }
  0x22   :  { %v109_v5 = vld.sshfl [vmem:[#allocation1] sm:$0xff pattern:$0x75316420]  ;;  %v110_v6 = vld.sshfl [vmem:[#allocation1 + $0x8] sm:$0xff pattern:$0x75316420] }
  0x23   :  { %125 = vst [vmem:[#allocation2 + $0x40] sm:$0xf] %v109_v5 }
  0x24   :  { %126 = vst [vmem:[#allocation2 + $0x20] sm:$0xf] %v110_v6 }
  0x25   :  { %92 = vst [vmem:[#allocation2 + $0x58] sm:$0x3] %v76_v15 }
  0x26   :  { %v133_v7 = vld [vmem:[#allocation2 + $0x30] sm:$0xff]  ;;  %93 = vst [vmem:[#allocation2 + $0x18] sm:$0x3] %v77_v19 }
  0x27   :  { %v1931_v8 = vand.u32 4294901760, %v133_v7  ;;  %v134_v9 = vld [vmem:[#allocation2] sm:$0xff]  ;;  %73 = vst [vmem:[#allocation1 + $0x20] ss:$4 sm:$0xff] %v64_v58 }
  0x28   :  { %v1933_v10 = vand.u32 4294901760, %v134_v9  ;;  %v111_v32 = vld.sshfl [vmem:[#allocation1 + $0x10] sm:$0xff pattern:$0x75316420]  ;;  %61 = vst.msk [vmem:[#allocation3] sm:$0xff] %vm60_vm0, %v1890_v0 }
  0x29   :  { %v170_v11 = vsub.f32 %v133_v7, %v1931_v8  ;;  %127 = vst [vmem:[#allocation2 + $0x10] sm:$0xf] %v111_v32  ;;  %v112_v40 = vld.sshfl [vmem:[#allocation1 + $0x18] sm:$0xff pattern:$0x75316420] }
  0x2a   :  { %v141_v12 = vld [vmem:[#allocation2 + $0x40] sm:$0xff]  ;;  %v1937_v13 = vsub.f32 %v134_v9, %v1933_v10  ;;  %128 = vst [vmem:[#allocation2 + $0x38] sm:$0xf] %v112_v40 }
  0x2b   :  { %v1939_v16 = vand.u32 4294901760, %v141_v12  ;;  %v171_v17 = vand.u32 4294901760, %v170_v11  ;;  %v142_v18 = vld [vmem:[#allocation2 + $0x20] sm:$0xff]  ;;  %62 = vst.msk [vmem:[#allocation3 + $0x8] sm:$0xff] %vm60_vm0, %v1890_v0 }
  0x2c   :  { %v1941_v20 = vand.u32 4294901760, %v142_v18  ;;  %v1950_v24 = vand.u32 4294901760, %v1937_v13  ;;  %v135_v37 = vld [vmem:[#allocation2 + $0x58] sm:$0xff] }
  0x2d   :  { %166 = vmatpush.xpose.msra.mxu0 %v1939_v16  ;;  %v178_v21 = vsub.f32 %v141_v12, %v1939_v16  ;;  %267 = vmatpush.xpose.msra.mxu3 %v1939_v16  ;;  %v172_v22 = vsub.f32 %v170_v11, %v171_v17  ;;  %v1977_v39 = vand.u32 4294901760, %v135_v37  ;;  %v136_v50 = vld [vmem:[#allocation2 + $0x18] sm:$0xff] }
  0x2e   :  { %v1947_v23 = vsub.f32 %v142_v18, %v1941_v20  ;;  %v362_v30 = vsub.f32 %v1937_v13, %v1950_v24  ;;  %v2011_v52 = vand.u32 4294901760, %v136_v50  ;;  %v78_v62 = vld.sshfl [vmem:[#allocation1 + $0x20] sm:$0xff pattern:$0x73625140] }
  0x2f   :  { %237 = vmatpush.xpose.msra.mxu2 %v178_v21  ;;  %v179_v25 = vand.u32 4294901760, %v178_v21  ;;  %v173_v26 = vand.u32 4294901760, %v172_v22  ;;  %v1985_v42 = vsub.f32 %v135_v37, %v1977_v39  ;;  %v79_v63 = vld.sshfl [vmem:[#allocation1 + $0x28] sm:$0xff pattern:$0x73625140] }
  0x30   :  { %v1953_v27 = vand.u32 4294901760, %v1947_v23  ;;  %v363_v34 = vand.u32 4294901760, %v362_v30  ;;  %v143_v35 = vld [vmem:[#allocation2 + $0x10] sm:$0xff]  ;;  %v2016_v55 = vsub.f32 %v136_v50, %v2011_v52  ;;  %94 = vst [vmem:[#allocation2 + $0x50] sm:$0x3] %v78_v62 }
  0x31   :  { %168 = vmatpush.xpose.msra.mxu0 %v1931_v8  ;;  %v180_v28 = vsub.f32 %v178_v21, %v179_v25  ;;  %269 = vmatpush.xpose.msra.mxu3 %v1931_v8  ;;  %v1968_v36 = vand.u32 4294901760, %v143_v35  ;;  %v551_v44 = vand.u32 4294901760, %v1985_v42  ;;  %v144_v45 = vld [vmem:[#allocation2 + $0x38] sm:$0xff]  ;;  %106 = vst [vmem:[#allocation1 + $0x20] ss:$2 sm:$0xff] %v67_v61 }
  0x32   :  { %v370_v29 = vsub.f32 %v1947_v23, %v1953_v27  ;;  %v1997_v47 = vand.u32 4294901760, %v144_v45  ;;  %v2019_v56 = vand.u32 4294901760, %v2016_v55  ;;  %95 = vst [vmem:[#allocation2 + $0x68] sm:$0x3] %v79_v63 }
  0x33   :  { %v181_v31 = vand.u32 4294901760, %v180_v28  ;;  %240 = vmatpush.xpose.msra.mxu2 %v170_v11  ;;  %v1973_v38 = vsub.f32 %v143_v35, %v1968_v36  ;;  %v552_v48 = vsub.f32 %v1985_v42, %v551_v44  ;;  %v80_v28 = vld.sshfl [vmem:[#allocation1 + $0x30] sm:$0xff pattern:$0x73625140] }
  0x34   :  { %174 = vmatmul.f32.vlgmr.msra.gmra.mxu0 %v173_v26  ;;  %v371_v33 = vand.u32 4294901760, %v370_v29  ;;  %273 = vmatmul.f32.vlgmr.msra.gmra.mxu3 %v171_v17  ;;  %v2003_v49 = vsub.f32 %v144_v45, %v1997_v47  ;;  %v742_v59 = vsub.f32 %v2016_v55, %v2019_v56  ;;  %v81_v29 = vld.sshfl [vmem:[#allocation1 + $0x38] sm:$0xff pattern:$0x73625140]  ;;  %96 = vst [vmem:[#allocation2 + $0x8] sm:$0x3] %v80_v28 }
  0x35   :  { %300 = vmatpush.xpose.msrb.mxu0 %v179_v25  ;;  %205 = vmatpush.xpose.msra.mxu1 %v181_v31  ;;  %v1981_v41 = vand.u32 4294901760, %v1973_v38  ;;  %v553_v53 = vand.u32 4294901760, %v552_v48  ;;  %97 = vst [vmem:[#allocation2 + $0x48] sm:$0x3] %v81_v29 }
  0x36   :  { %243 = vmatmul.f32.vlgmr.msra.gmra.mxu2 %v170_v11  ;;  %395 = vmatpush.xpose.msrb.mxu3 %v371_v33  ;;  %v2009_v51 = vand.u32 4294901760, %v2003_v49  ;;  %v743_v60 = vand.u32 4294901760, %v742_v59 }
  0x37   :  { %356 = vmatpush.xpose.msrb.mxu2 %v1941_v20  ;;  %v560_v43 = vsub.f32 %v1973_v38, %v1981_v41  ;;  %v137_v4 = vld [vmem:[#allocation2 + $0x50] sm:$0xff] }
  0x38   :  { %v750_v54 = vsub.f32 %v2003_v49, %v2009_v51  ;;  %v113_v1 = vld.sshfl [vmem:[#allocation1 + $0x20] sm:$0xff pattern:$0x75316420]  ;;  %v2056_v6 = vand.u32 4294901760, %v137_v4 }
  0x39   :  { %304 = vmatpush.xpose.msrb.mxu0 %v171_v17  ;;  %211 = vmatpush.xpose.msra.mxu1 %v173_v26  ;;  %v561_v46 = vand.u32 4294901760, %v560_v43  ;;  %129 = vst [vmem:[#allocation2 + $0x60] sm:$0xf] %v113_v1  ;;  %v114_v7 = vld.sshfl [vmem:[#allocation1 + $0x28] sm:$0xff pattern:$0x75316420] }
  0x3a   :  { %401 = vmatpush.xpose.msrb.mxu3 %v363_v34  ;;  %v2021_v57 = vand.u32 4294901760, %v750_v54  ;;  %130 = vst [vmem:[#allocation2 + $0x70] sm:$0xf] %v114_v7  ;;  %v930_v9 = vsub.f32 %v137_v4, %v2056_v6  ;;  %v138_v17 = vld [vmem:[#allocation2 + $0x68] sm:$0xff] }
  0x3b   :  { %358 = vmatpush.xpose.msrb.mxu2 %v1933_v10  ;;  %v2084_v19 = vand.u32 4294901760, %v138_v17 }
  0x3c   :  { %182 = vmatmul.f32.gmra.mxu0 %v181_v31  ;;  %213 = vmatmul.f32.vlgmr.msra.gmra.mxu1 %v1931_v8  ;;  %v931_v11 = vand.u32 4294901760, %v930_v9 }
  0x3d   :  { %427 = vmatpush.xpose.msra.mxu0 %v1947_v23  ;;  %329 = vmatpush.xpose.msrb.mxu1 %v1939_v16  ;;  %v2090_v22 = vsub.f32 %v138_v17, %v2084_v19 }
  0x3e   :  { %519 = vmatpush.xpose.msra.mxu3 %v1941_v20  ;;  %248 = vmatmul.f32.gmra.mxu2 %v178_v21  ;;  %v932_v15 = vsub.f32 %v930_v9, %v931_v11 }
  0x3f   :  { %490 = vmatpush.xpose.msra.mxu2 %v1953_v27  ;;  %279 = vmatmul.f32.gmra.mxu3 %v179_v25 }
  0x40   :  { %v145_v2 = vld [vmem:[#allocation2 + $0x60] sm:$0xff] }
  0x41   :  { %331 = vmatpush.xpose.msrb.mxu1 %v1931_v8  ;;  %430 = vmatpush.xpose.msra.mxu0 %v1937_v13  ;;  %v2048_v3 = vand.u32 4294901760, %v145_v2  ;;  %v146_v12 = vld [vmem:[#allocation2 + $0x70] sm:$0xff] }
  0x42   :  { %521 = vmatpush.xpose.msra.mxu3 %v1933_v10  ;;  %v2072_v14 = vand.u32 4294901760, %v146_v12 }
  0x43   :  { %494 = vmatpush.xpose.msra.mxu2 %v1950_v24  ;;  %v2054_v5 = vsub.f32 %v145_v2, %v2048_v3 }
  0x44   :  { %217 = vmatmul.f32.gmra.mxu1 %v1939_v16  ;;  %306 = vmatmul.f32.vlgmr.msrb.gmra.mxu0 %v1931_v8 }
  0x45   :  { %457 = vmatpush.xpose.msra.mxu1 %v1941_v20  ;;  %546 = vmatpush.xpose.msrb.mxu0 %v1968_v36 }
  0x46   :  { %364 = vmatmul.f32.vlgmr.msrb.gmra.mxu2 %v363_v34 }
  0x47   :  { %403 = vmatmul.f32.vlgmr.msrb.gmra.mxu3 %v1933_v10  ;;  %617 = vmatpush.xpose.msrb.mxu2 %v1973_v38 }
  0x48   :  { %647 = vmatpush.xpose.msrb.mxu3 %v1968_v36 }
  0x49   :  { %459 = vmatpush.xpose.msra.mxu1 %v1933_v10  ;;  %548 = vmatpush.xpose.msrb.mxu0 %v1977_v39 }
  0x4b   :  { %620 = vmatpush.xpose.msrb.mxu2 %v1985_v42 }
  0x4c   :  { %649 = vmatpush.xpose.msrb.mxu3 %v1977_v39  ;;  %310 = vmatmul.f32.gmra.mxu0 %v1939_v16 }
  0x4d   :  { %333 = vmatmul.f32.vlgmr.msrb.gmra.mxu1 %v1931_v8  ;;  %v2060_v8 = vand.u32 4294901760, %v2054_v5 }
  0x4e   :  { %585 = vmatpush.xpose.msrb.mxu1 %v561_v46  ;;  %372 = vmatmul.f32.gmra.mxu2 %v371_v33  ;;  %v139_v33 = vld [vmem:[#allocation2 + $0x8] sm:$0xff] }
  0x4f   :  { %407 = vmatmul.f32.gmra.mxu3 %v1941_v20  ;;  %v2129_v35 = vand.u32 4294901760, %v139_v33 }
  0x52   :  { %591 = vmatpush.xpose.msrb.mxu1 %v553_v53 }
  0x54   :  { %433 = vmatmul.f32.vlgmr.msra.gmra.mxu0 %v1937_v13 }
  0x55   :  { %337 = vmatmul.f32.gmra.mxu1 %v1939_v16  ;;  %680 = vmatpush.xpose.msra.mxu0 %v1981_v41  ;;  %v2076_v16 = vsub.f32 %v146_v12, %v2072_v14 }
  0x56   :  { %496 = vmatmul.f32.vlgmr.msra.gmra.mxu2 %v1933_v10 }
  0x57   :  { %523 = vmatmul.f32.vlgmr.msra.gmra.mxu3 %v1933_v10  ;;  %736 = vmatpush.xpose.msra.mxu2 %v1997_v47  ;;  %v940_v10 = vsub.f32 %v2054_v5, %v2060_v8  ;;  %v2082_v18 = vand.u32 4294901760, %v2076_v16 }
  0x58   :  { %775 = vmatpush.xpose.msra.mxu3 %v2021_v57 }
  0x59   :  { %684 = vmatpush.xpose.msra.mxu0 %v551_v44  ;;  %v941_v13 = vand.u32 4294901760, %v940_v10  ;;  %v1130_v21 = vsub.f32 %v2076_v16, %v2082_v18 }
  0x5b   :  { %738 = vmatpush.xpose.msra.mxu2 %v2011_v52 }
  0x5c   :  { %781 = vmatpush.xpose.msra.mxu3 %v743_v60  ;;  %438 = vmatmul.f32.gmra.mxu0 %v1947_v23  ;;  %v2093_v23 = vand.u32 4294901760, %v2090_v22 }
  0x5d   :  { %463 = vmatmul.f32.vlgmr.msra.gmra.mxu1 %v1950_v24  ;;  %v2095_v24 = vand.u32 4294901760, %v1130_v21 }
  0x5e   :  { %709 = vmatpush.xpose.msra.mxu1 %v1968_v36  ;;  %500 = vmatmul.f32.gmra.mxu2 %v1941_v20  ;;  %v1122_v25 = vsub.f32 %v2090_v22, %v2093_v23 }
  0x5f   :  { %527 = vmatmul.f32.gmra.mxu3 %v1941_v20  ;;  %v933_v20 = vand.u32 4294901760, %v932_v15 }
  0x60   :  { %v1123_v26 = vand.u32 4294901760, %v1122_v25 }
  0x62   :  { %711 = vmatpush.xpose.msra.mxu1 %v1977_v39 }
  0x64   :  { %554 = vmatmul.f32.vlgmr.msrb.gmra.mxu0 %v553_v53 }
  0x65   :  { %469 = vmatmul.f32.gmra.mxu1 %v1953_v27  ;;  %807 = vmatpush.xpose.msrb.mxu0 %v2003_v49  ;;  %v68_v27 = vld [vmem:[#allocation7 + $0x18] sm:$0xff] }
  0x66   :  { %623 = vmatmul.f32.vlgmr.msrb.gmra.mxu2 %v1985_v42  ;;  %108 = vst [vmem:[#allocation1 + $0x30] ss:$2 sm:$0xff] %v68_v27 }
  0x67   :  { %653 = vmatmul.f32.vlgmr.msrb.gmra.mxu3 %v551_v44  ;;  %870 = vmatpush.xpose.msrb.mxu2 %v2009_v51 }
  0x68   :  { %899 = vmatpush.xpose.msrb.mxu3 %v1997_v47 }
  0x69   :  { %810 = vmatpush.xpose.msrb.mxu0 %v2016_v55 }
  0x6b   :  { %874 = vmatpush.xpose.msrb.mxu2 %v2019_v56 }
  0x6c   :  { %901 = vmatpush.xpose.msrb.mxu3 %v2011_v52  ;;  %562 = vmatmul.f32.gmra.mxu0 %v561_v46  ;;  %v140_v46 = vld [vmem:[#allocation2 + $0x48] sm:$0xff] }
  0x6d   :  { %593 = vmatmul.f32.vlgmr.msrb.gmra.mxu1 %v1977_v39  ;;  %v115_v30 = vld.sshfl [vmem:[#allocation1 + $0x30] sm:$0xff pattern:$0x75316420]  ;;  %v2165_v48 = vand.u32 4294901760, %v140_v46 }
  0x6e   :  { %837 = vmatpush.xpose.msrb.mxu1 %v1997_v47  ;;  %628 = vmatmul.f32.gmra.mxu2 %v1973_v38  ;;  %131 = vst [vmem:[#allocation2 + $0x78] sm:$0xf] %v115_v30  ;;  %v2136_v38 = vsub.f32 %v139_v33, %v2129_v35 }
  0x6f   :  { %659 = vmatmul.f32.gmra.mxu3 %v1981_v41 }
  0x70   :  { %v1311_v40 = vand.u32 4294901760, %v2136_v38 }
  0x72   :  { %839 = vmatpush.xpose.msrb.mxu1 %v2011_v52  ;;  %v1312_v44 = vsub.f32 %v2136_v38, %v1311_v40 }
  0x74   :  { %686 = vmatmul.f32.vlgmr.msra.gmra.mxu0 %v1977_v39 }
  0x75   :  { %597 = vmatmul.f32.gmra.mxu1 %v1968_v36  ;;  %926 = vmatpush.xpose.msra.mxu0 %v2048_v3  ;;  %v147_v31 = vld [vmem:[#allocation2 + $0x78] sm:$0xff] }
  0x76   :  { %744 = vmatmul.f32.vlgmr.msra.gmra.mxu2 %v743_v60  ;;  %v2121_v32 = vand.u32 4294901760, %v147_v31 }
  0x77   :  { %783 = vmatmul.f32.vlgmr.msra.gmra.mxu3 %v2011_v52  ;;  %997 = vmatpush.xpose.msra.mxu2 %v2054_v5 }
  0x78   :  { %1027 = vmatpush.xpose.msra.mxu3 %v2048_v3  ;;  %v2127_v34 = vsub.f32 %v147_v31, %v2121_v32 }
  0x79   :  { %928 = vmatpush.xpose.msra.mxu0 %v2056_v6 }
  0x7a   :  { %v2133_v37 = vand.u32 4294901760, %v2127_v34 }
  0x7b   :  { %1000 = vmatpush.xpose.msra.mxu2 %v930_v9 }
  0x7c   :  { %1029 = vmatpush.xpose.msra.mxu3 %v2056_v6  ;;  %690 = vmatmul.f32.gmra.mxu0 %v1968_v36 }
  0x7d   :  { %713 = vmatmul.f32.vlgmr.msra.gmra.mxu1 %v1977_v39  ;;  %v1320_v39 = vsub.f32 %v2127_v34, %v2133_v37 }
  0x7e   :  { %965 = vmatpush.xpose.msra.mxu1 %v941_v13  ;;  %752 = vmatmul.f32.gmra.mxu2 %v2021_v57 }
  0x7f   :  { %787 = vmatmul.f32.gmra.mxu3 %v1997_v47  ;;  %v2147_v42 = vand.u32 4294901760, %v1320_v39 }
  0x82   :  { %971 = vmatpush.xpose.msra.mxu1 %v933_v20 }
  0x84   :  { %813 = vmatmul.f32.vlgmr.msrb.gmra.mxu0 %v2016_v55 }
  0x85   :  { %717 = vmatmul.f32.gmra.mxu1 %v1968_v36  ;;  %1060 = vmatpush.xpose.msrb.mxu0 %v2060_v8  ;;  %v116_v36 = vld.sshfl [vmem:[#allocation1 + $0x38] sm:$0xff pattern:$0x75316420] }
  0x86   :  { %876 = vmatmul.f32.vlgmr.msrb.gmra.mxu2 %v2011_v52  ;;  %132 = vst [vmem:[#allocation2 + $0x28] sm:$0xf] %v116_v36 }
  0x87   :  { %903 = vmatmul.f32.vlgmr.msrb.gmra.mxu3 %v2011_v52  ;;  %1116 = vmatpush.xpose.msrb.mxu2 %v2072_v14 }
  0x88   :  { %1155 = vmatpush.xpose.msrb.mxu3 %v2095_v24 }
  0x89   :  { %1064 = vmatpush.xpose.msrb.mxu0 %v931_v11 }
  0x8b   :  { %1118 = vmatpush.xpose.msrb.mxu2 %v2084_v19 }
  0x8c   :  { %1161 = vmatpush.xpose.msrb.mxu3 %v1123_v26  ;;  %818 = vmatmul.f32.gmra.mxu0 %v2003_v49  ;;  %v1313_v49 = vand.u32 4294901760, %v1312_v44 }
  0x8d   :  { %843 = vmatmul.f32.vlgmr.msrb.gmra.mxu1 %v2019_v56  ;;  %v148_v41 = vld [vmem:[#allocation2 + $0x28] sm:$0xff] }
  0x8e   :  { %1089 = vmatpush.xpose.msrb.mxu1 %v2048_v3  ;;  %880 = vmatmul.f32.gmra.mxu2 %v1997_v47  ;;  %v2150_v43 = vand.u32 4294901760, %v148_v41 }
  0x8f   :  { %907 = vmatmul.f32.gmra.mxu3 %v1997_v47 }
  0x90   :  { %v2156_v45 = vsub.f32 %v148_v41, %v2150_v43 }
  0x92   :  { %1091 = vmatpush.xpose.msrb.mxu1 %v2056_v6  ;;  %v2163_v47 = vand.u32 4294901760, %v2156_v45 }
  0x94   :  { %934 = vmatmul.f32.vlgmr.msra.gmra.mxu0 %v933_v20  ;;  %v1510_v50 = vsub.f32 %v2156_v45, %v2163_v47 }
  0x95   :  { %849 = vmatmul.f32.gmra.mxu1 %v2009_v51  ;;  %1187 = vmatpush.xpose.msra.mxu0 %v2076_v16  ;;  %v2171_v51 = vsub.f32 %v140_v46, %v2165_v48 }
  0x96   :  { %1003 = vmatmul.f32.vlgmr.msra.gmra.mxu2 %v930_v9  ;;  %v2176_v54 = vand.u32 4294901760, %v1510_v50 }
  0x97   :  { %1033 = vmatmul.f32.vlgmr.msra.gmra.mxu3 %v931_v11  ;;  %1250 = vmatpush.xpose.msra.mxu2 %v2082_v18  ;;  %v2174_v53 = vand.u32 4294901760, %v2171_v51 }
  0x98   :  { %1279 = vmatpush.xpose.msra.mxu3 %v2072_v14 }
  0x99   :  { %1190 = vmatpush.xpose.msra.mxu0 %v2090_v22  ;;  %v1502_v55 = vsub.f32 %v2171_v51, %v2174_v53 }
  0x9b   :  { %1254 = vmatpush.xpose.msra.mxu2 %v2093_v23  ;;  %v1503_v56 = vand.u32 4294901760, %v1502_v55 }
  0x9c   :  { %1281 = vmatpush.xpose.msra.mxu3 %v2084_v19  ;;  %942 = vmatmul.f32.gmra.mxu0 %v941_v13 }
  0x9d   :  { %973 = vmatmul.f32.vlgmr.msra.gmra.mxu1 %v2056_v6 }
  0x9e   :  { %1217 = vmatpush.xpose.msra.mxu1 %v2072_v14  ;;  %1008 = vmatmul.f32.gmra.mxu2 %v2054_v5 }
  0x9f   :  { %1039 = vmatmul.f32.gmra.mxu3 %v2060_v8 }
  0xa2   :  { %1219 = vmatpush.xpose.msra.mxu1 %v2084_v19 }
  0xa4   :  { %1066 = vmatmul.f32.vlgmr.msrb.gmra.mxu0 %v2056_v6 }
  0xa5   :  { %977 = vmatmul.f32.gmra.mxu1 %v2048_v3  ;;  %1306 = vmatpush.xpose.msrb.mxu0 %v2121_v32 }
  0xa6   :  { %1124 = vmatmul.f32.vlgmr.msrb.gmra.mxu2 %v1123_v26 }
  0xa7   :  { %1163 = vmatmul.f32.vlgmr.msrb.gmra.mxu3 %v2084_v19  ;;  %1377 = vmatpush.xpose.msrb.mxu2 %v2127_v34 }
  0xa8   :  { %1407 = vmatpush.xpose.msrb.mxu3 %v2121_v32 }
  0xa9   :  { %1308 = vmatpush.xpose.msrb.mxu0 %v2129_v35 }
  0xab   :  { %1380 = vmatpush.xpose.msrb.mxu2 %v2136_v38 }
  0xac   :  { %1409 = vmatpush.xpose.msrb.mxu3 %v2129_v35  ;;  %1070 = vmatmul.f32.gmra.mxu0 %v2048_v3 }
  0xad   :  { %1093 = vmatmul.f32.vlgmr.msrb.gmra.mxu1 %v2056_v6 }
  0xae   :  { %1345 = vmatpush.xpose.msrb.mxu1 %v2147_v42  ;;  %1132 = vmatmul.f32.gmra.mxu2 %v2095_v24 }
  0xaf   :  { %1167 = vmatmul.f32.gmra.mxu3 %v2072_v14 }
  0xb1   :  { %v175_v52 = vpop.f32.mrf.mxu0 }
  0xb2   :  { %1351 = vmatpush.xpose.msrb.mxu1 %v1313_v49 }
  0xb4   :  { %1193 = vmatmul.f32.vlgmr.msra.gmra.mxu0 %v2090_v22 }
  0xb5   :  { %1097 = vmatmul.f32.gmra.mxu1 %v2048_v3  ;;  %1440 = vmatpush.xpose.msra.mxu0 %v2133_v37 }
  0xb6   :  { %1256 = vmatmul.f32.vlgmr.msra.gmra.mxu2 %v2084_v19 }
  0xb7   :  { %1283 = vmatmul.f32.vlgmr.msra.gmra.mxu3 %v2084_v19  ;;  %1496 = vmatpush.xpose.msra.mxu2 %v2150_v43  ;;  %v274_v57 = vpop.f32.mrf.mxu3 }
  0xb8   :  { %1535 = vmatpush.xpose.msra.mxu3 %v2176_v54 }
  0xb9   :  { %v183_v58 = vpop.f32.mrf.mxu0  ;;  %v214_v59 = vpop.f32.mrf.mxu1  ;;  %1444 = vmatpush.xpose.msra.mxu0 %v1311_v40 }
  0xba   :  { %v215_v60 = vadd.f32 %v214_v59, %v175_v52  ;;  %v244_v61 = vpop.f32.mrf.mxu2 }
  0xbb   :  { %1498 = vmatpush.xpose.msra.mxu2 %v2165_v48 }
  0xbc   :  { %1541 = vmatpush.xpose.msra.mxu3 %v1503_v56  ;;  %v245_v62 = vadd.f32 %v244_v61, %v215_v60  ;;  %1198 = vmatmul.f32.gmra.mxu0 %v2076_v16 }
  0xbd   :  { %1223 = vmatmul.f32.vlgmr.msra.gmra.mxu1 %v2093_v23 }
  0xbe   :  { %1469 = vmatpush.xpose.msra.mxu1 %v2121_v32  ;;  %v275_v63 = vadd.f32 %v274_v57, %v245_v62  ;;  %1260 = vmatmul.f32.gmra.mxu2 %v2072_v14 }
  0xbf   :  { %1287 = vmatmul.f32.gmra.mxu3 %v2072_v14 }
  0xc1   :  { %v218_v2 = vpop.f32.mrf.mxu1  ;;  %v307_v3 = vpop.f32.mrf.mxu0 }
  0xc2   :  { %v280_v1 = vpop.f32.mrf.mxu3  ;;  %1471 = vmatpush.xpose.msra.mxu1 %v2129_v35  ;;  %v219_v4 = vadd.f32 %v218_v2, %v183_v58  ;;  %v308_v5 = vadd.f32 %v307_v3, %v275_v63  ;;  %v249_v6 = vpop.f32.mrf.mxu2 }
  0xc4   :  { %v250_v7 = vadd.f32 %v249_v6, %v219_v4  ;;  %1314 = vmatmul.f32.vlgmr.msrb.gmra.mxu0 %v1313_v49 }
  0xc5   :  { %1229 = vmatmul.f32.gmra.mxu1 %v2082_v18  ;;  %1567 = vmatpush.xpose.msrb.mxu0 %v2156_v45 }
  0xc6   :  { %v281_v8 = vadd.f32 %v280_v1, %v250_v7  ;;  %1383 = vmatmul.f32.vlgmr.msrb.gmra.mxu2 %v2136_v38 }
  0xc7   :  { %1413 = vmatmul.f32.vlgmr.msrb.gmra.mxu3 %v1311_v40  ;;  %1630 = vmatpush.xpose.msrb.mxu2 %v2163_v47 }
  0xc8   :  { %1659 = vmatpush.xpose.msrb.mxu3 %v2150_v43 }
  0xc9   :  { %v311_v10 = vpop.f32.mrf.mxu0  ;;  %1570 = vmatpush.xpose.msrb.mxu0 %v2171_v51 }
  0xca   :  { %v404_v9 = vpop.f32.mrf.mxu3  ;;  %v334_v11 = vpop.f32.mrf.mxu1  ;;  %v312_v12 = vadd.f32 %v311_v10, %v281_v8 }
  0xcb   :  { %v335_v13 = vadd.f32 %v334_v11, %v308_v5  ;;  %v365_v14 = vpop.f32.mrf.mxu2  ;;  %1634 = vmatpush.xpose.msrb.mxu2 %v2174_v53 }
  0xcc   :  { %1661 = vmatpush.xpose.msrb.mxu3 %v2165_v48  ;;  %1322 = vmatmul.f32.gmra.mxu0 %v2147_v42 }
  0xcd   :  { %v366_v15 = vadd.f32 %v365_v14, %v335_v13  ;;  %1353 = vmatmul.f32.vlgmr.msrb.gmra.mxu1 %v2129_v35 }
  0xce   :  { %1597 = vmatpush.xpose.msrb.mxu1 %v2150_v43  ;;  %1388 = vmatmul.f32.gmra.mxu2 %v2127_v34 }
  0xcf   :  { %1419 = vmatmul.f32.gmra.mxu3 %v2133_v37  ;;  %v405_v16 = vadd.f32 %v404_v9, %v366_v15 }
  0xd1   :  { %v434_v19 = vpop.f32.mrf.mxu0 }
  0xd2   :  { %v408_v17 = vpop.f32.mrf.mxu3  ;;  %v338_v18 = vpop.f32.mrf.mxu1  ;;  %1599 = vmatpush.xpose.msrb.mxu1 %v2165_v48  ;;  %v435_v21 = vadd.f32 %v434_v19, %v405_v16 }
  0xd3   :  { %v339_v20 = vadd.f32 %v338_v18, %v312_v12  ;;  %v373_v22 = vpop.f32.mrf.mxu2 }
  0xd4   :  { %1446 = vmatmul.f32.vlgmr.msra.gmra.mxu0 %v2129_v35 }
  0xd5   :  { %v374_v23 = vadd.f32 %v373_v22, %v339_v20  ;;  %1357 = vmatmul.f32.gmra.mxu1 %v2121_v32 }
  0xd6   :  { %1504 = vmatmul.f32.vlgmr.msra.gmra.mxu2 %v1503_v56 }
  0xd7   :  { %1543 = vmatmul.f32.vlgmr.msra.gmra.mxu3 %v2165_v48  ;;  %v409_v24 = vadd.f32 %v408_v17, %v374_v23 }
  0xd9   :  { %v439_v26 = vpop.f32.mrf.mxu0 }
  0xda   :  { %v524_v25 = vpop.f32.mrf.mxu3  ;;  %v464_v27 = vpop.f32.mrf.mxu1  ;;  %v440_v28 = vadd.f32 %v439_v26, %v409_v24 }
  0xdb   :  { %v465_v29 = vadd.f32 %v464_v27, %v435_v21  ;;  %v497_v30 = vpop.f32.mrf.mxu2 }
  0xdc   :  { %1450 = vmatmul.f32.gmra.mxu0 %v2121_v32 }
  0xdd   :  { %v498_v31 = vadd.f32 %v497_v30, %v465_v29  ;;  %1473 = vmatmul.f32.vlgmr.msra.gmra.mxu1 %v2129_v35 }
  0xde   :  { %1512 = vmatmul.f32.gmra.mxu2 %v2176_v54 }
  0xdf   :  { %1547 = vmatmul.f32.gmra.mxu3 %v2150_v43  ;;  %v525_v33 = vadd.f32 %v524_v25, %v498_v31 }
  0xe1   :  { %v555_v37 = vpop.f32.mrf.mxu0 }
  0xe2   :  { %v528_v34 = vpop.f32.mrf.mxu3  ;;  %v470_v36 = vpop.f32.mrf.mxu1  ;;  %v556_v39 = vadd.f32 %v555_v37, %v525_v33 }
  0xe3   :  { %v471_v38 = vadd.f32 %v470_v36, %v440_v28  ;;  %v501_v40 = vpop.f32.mrf.mxu2 }
  0xe4   :  { %1573 = vmatmul.f32.vlgmr.msrb.gmra.mxu0 %v2171_v51 }
  0xe5   :  { %v502_v41 = vadd.f32 %v501_v40, %v471_v38  ;;  %1477 = vmatmul.f32.gmra.mxu1 %v2121_v32 }
  0xe6   :  { %1636 = vmatmul.f32.vlgmr.msrb.gmra.mxu2 %v2165_v48 }
  0xe7   :  { %1663 = vmatmul.f32.vlgmr.msrb.gmra.mxu3 %v2165_v48  ;;  %v529_v42 = vadd.f32 %v528_v34, %v502_v41 }
  0xe9   :  { %v563_v44 = vpop.f32.mrf.mxu0 }
  0xea   :  { %v654_v35 = vpop.f32.mrf.mxu3  ;;  %v594_v46 = vpop.f32.mrf.mxu1  ;;  %v564_v49 = vadd.f32 %v563_v44, %v529_v42 }
  0xeb   :  { %v595_v50 = vadd.f32 %v594_v46, %v556_v39  ;;  %v624_v52 = vpop.f32.mrf.mxu2 }
  0xec   :  { %1578 = vmatmul.f32.gmra.mxu0 %v2156_v45 }
  0xed   :  { %v625_v54 = vadd.f32 %v624_v52, %v595_v50  ;;  %1603 = vmatmul.f32.vlgmr.msrb.gmra.mxu1 %v2174_v53 }
  0xee   :  { %1640 = vmatmul.f32.gmra.mxu2 %v2150_v43 }
  0xef   :  { %1667 = vmatmul.f32.gmra.mxu3 %v2150_v43  ;;  %v655_v32 = vadd.f32 %v654_v35, %v625_v54 }
  0xf1   :  { %v687_v56 = vpop.f32.mrf.mxu0 }
  0xf2   :  { %v660_v51 = vpop.f32.mrf.mxu3  ;;  %v598_v55 = vpop.f32.mrf.mxu1  ;;  %v688_v10 = vadd.f32 %v687_v56, %v655_v32 }
  0xf3   :  { %v599_v48 = vadd.f32 %v598_v55, %v564_v49  ;;  %v629_v57 = vpop.f32.mrf.mxu2 }
  0xf5   :  { %v630_v58 = vadd.f32 %v629_v57, %v599_v48  ;;  %1609 = vmatmul.f32.gmra.mxu1 %v2163_v47 }
  0xf7   :  { %v661_v59 = vadd.f32 %v660_v51, %v630_v58 }
  0xf9   :  { %v691_v61 = vpop.f32.mrf.mxu0 }
  0xfa   :  { %v784_v60 = vpop.f32.mrf.mxu3  ;;  %v714_v62 = vpop.f32.mrf.mxu1  ;;  %v692_v16 = vadd.f32 %v691_v61, %v661_v59 }
  0xfb   :  { %v745_v45 = vpop.f32.mrf.mxu2  ;;  %v715_v11 = vadd.f32 %v714_v62, %v688_v10 }
  0xfd   :  { %v746_v14 = vadd.f32 %v745_v45, %v715_v11 }
  0xff   :  { %v785_v17 = vadd.f32 %v784_v60, %v746_v14 }
 0x101   :  { %v814_v1 = vpop.f32.mrf.mxu0 }
 0x102   :  { %v788_v63 = vpop.f32.mrf.mxu3  ;;  %v718_v53 = vpop.f32.mrf.mxu1  ;;  %v815_v19 = vadd.f32 %v814_v1, %v785_v17 }
 0x103   :  { %v753_v2 = vpop.f32.mrf.mxu2  ;;  %v719_v18 = vadd.f32 %v718_v53, %v692_v16 }
 0x105   :  { %v754_v23 = vadd.f32 %v753_v2, %v719_v18 }
 0x107   :  { %v789_v26 = vadd.f32 %v788_v63, %v754_v23 }
 0x109   :  { %v819_v4 = vpop.f32.mrf.mxu0 }
 0x10a   :  { %v904_v3 = vpop.f32.mrf.mxu3  ;;  %v844_v43 = vpop.f32.mrf.mxu1  ;;  %v820_v28 = vadd.f32 %v819_v4, %v789_v26 }
 0x10b   :  { %v877_v5 = vpop.f32.mrf.mxu2  ;;  %v845_v24 = vadd.f32 %v844_v43, %v815_v19 }
 0x10d   :  { %v878_v27 = vadd.f32 %v877_v5, %v845_v24 }
 0x10f   :  { %v905_v33 = vadd.f32 %v904_v3, %v878_v27 }
 0x111   :  { %v935_v8 = vpop.f32.mrf.mxu0 }
 0x112   :  { %v908_v6 = vpop.f32.mrf.mxu3  ;;  %v850_v7 = vpop.f32.mrf.mxu1  ;;  %v936_v37 = vadd.f32 %v935_v8, %v905_v33 }
 0x113   :  { %v881_v9 = vpop.f32.mrf.mxu2  ;;  %v851_v34 = vadd.f32 %v850_v7, %v820_v28 }
 0x115   :  { %v882_v38 = vadd.f32 %v881_v9, %v851_v34 }
 0x117   :  { %v909_v35 = vadd.f32 %v908_v6, %v882_v38 }
 0x119   :  { %v943_v12 = vpop.f32.mrf.mxu0 }
 0x11a   :  { %v1034_v47 = vpop.f32.mrf.mxu3  ;;  %v974_v13 = vpop.f32.mrf.mxu1  ;;  %v944_v49 = vadd.f32 %v943_v12, %v909_v35 }
 0x11b   :  { %v1004_v15 = vpop.f32.mrf.mxu2  ;;  %v975_v39 = vadd.f32 %v974_v13, %v936_v37 }
 0x11d   :  { %v1005_v44 = vadd.f32 %v1004_v15, %v975_v39 }
 0x11f   :  { %v1035_v50 = vadd.f32 %v1034_v47, %v1005_v44 }
 0x121   :  { %v1067_v22 = vpop.f32.mrf.mxu0 }
 0x122   :  { %v1040_v20 = vpop.f32.mrf.mxu3  ;;  %v978_v21 = vpop.f32.mrf.mxu1  ;;  %v1068_v54 = vadd.f32 %v1067_v22, %v1035_v50 }
 0x123   :  { %v1009_v25 = vpop.f32.mrf.mxu2  ;;  %v979_v52 = vadd.f32 %v978_v21, %v944_v49 }
 0x125   :  { %v1010_v56 = vadd.f32 %v1009_v25, %v979_v52 }
 0x127   :  { %v1041_v58 = vadd.f32 %v1040_v20, %v1010_v56 }
 0x129   :  { %v1071_v30 = vpop.f32.mrf.mxu0 }
 0x12a   :  { %v1164_v29 = vpop.f32.mrf.mxu3  ;;  %v1094_v31 = vpop.f32.mrf.mxu1  ;;  %v1072_v60 = vadd.f32 %v1071_v30, %v1041_v58 }
 0x12b   :  { %v1125_v36 = vpop.f32.mrf.mxu2  ;;  %v1095_v48 = vadd.f32 %v1094_v31, %v1068_v54  ;;  %v149_v54 = vld [vmem:[#allocation3] sm:$0xff] }
 0x12d   :  { %v1126_v59 = vadd.f32 %v1125_v36, %v1095_v48 }
 0x12f   :  { %v1165_v63 = vadd.f32 %v1164_v29, %v1126_v59 }
 0x131   :  { %v1194_v42 = vpop.f32.mrf.mxu0 }
 0x132   :  { %v1168_v40 = vpop.f32.mrf.mxu3  ;;  %v1098_v41 = vpop.f32.mrf.mxu1  ;;  %v1195_v2 = vadd.f32 %v1194_v42, %v1165_v63  ;;  %v150_v63 = vld [vmem:[#allocation3 + $0x8] sm:$0xff] }
 0x133   :  { %v1133_v46 = vpop.f32.mrf.mxu2  ;;  %v1099_v53 = vadd.f32 %v1098_v41, %v1072_v60 }
 0x135   :  { %v1134_v3 = vadd.f32 %v1133_v46, %v1099_v53 }
 0x137   :  { %v1169_v7 = vadd.f32 %v1168_v40, %v1134_v3 }
 0x139   :  { %v1199_v51 = vpop.f32.mrf.mxu0 }
 0x13a   :  { %v1284_v32 = vpop.f32.mrf.mxu3  ;;  %v1224_v55 = vpop.f32.mrf.mxu1  ;;  %v1200_v10 = vadd.f32 %v1199_v51, %v1169_v7 }
 0x13b   :  { %v1257_v57 = vpop.f32.mrf.mxu2  ;;  %v1225_v4 = vadd.f32 %v1224_v55, %v1195_v2  ;;  %v1681_v55 = vlaneseq }
 0x13d   :  { %v1258_v8 = vadd.f32 %v1257_v57, %v1225_v4 }
 0x13f   :  { %v1285_v11 = vadd.f32 %v1284_v32, %v1258_v8 }
 0x141   :  { %v1315_v45 = vpop.f32.mrf.mxu0 }
 0x142   :  { %v1288_v61 = vpop.f32.mrf.mxu3  ;;  %v1230_v62 = vpop.f32.mrf.mxu1  ;;  %v1316_v12 = vadd.f32 %v1315_v45, %v1285_v11 }
 0x143   :  { %v1261_v1 = vpop.f32.mrf.mxu2  ;;  %v1231_v47 = vadd.f32 %v1230_v62, %v1200_v10  ;;  %v1685_v62 = vand.u32 127, %v1681_v55 }
 0x145   :  { %v1262_v16 = vadd.f32 %v1261_v1, %v1231_v47  ;;  %vm1714_vm3 = vcmp.ge.s32.totalorder %v1685_v62, 8  ;;  %vm1715_vm4 = vcmp.lt.s32.totalorder %v1685_v62, 12  ;;  %vm1713_vm5 = vcmp.lt.s32.totalorder %v1685_v62, 2 }
 0x146   :  { %vm1716_vm6 = vmand %vm1714_vm3, %vm1715_vm4  ;;  %vm1737_vm10 = vcmp.lt.s32.totalorder %v1685_v62, 8 }
 0x147   :  { %v1289_v19 = vadd.f32 %v1288_v61, %v1262_v16  ;;  %v1682_v61 = vshrl.u32 %v1681_v55, 7  ;;  %vm1717_vm8 = vmor %vm1713_vm5, %vm1716_vm6 }
 0x148   :  { %vm1748_vm12 = vmxor %vm1737_vm10, %vm1891_vm11 }
 0x149   :  { %v1323_v5 = vpop.f32.mrf.mxu0  ;;  %vm1686_vm1 = vcmp.eq.s32.totalorder %v1682_v61, %v1685_v62  ;;  %vm1703_vm7 = vcmp.lt.s32.totalorder %v1682_v61, 2 }
 0x14a   :  { %v1414_v43 = vpop.f32.mrf.mxu3  ;;  %v1354_v6 = vpop.f32.mrf.mxu1  ;;  %v1324_v21 = vadd.f32 %v1323_v5, %v1289_v19 }
 0x14b   :  { %v1384_v9 = vpop.f32.mrf.mxu2  ;;  %v1355_v17 = vadd.f32 %v1354_v6, %v1316_v12 }
 0x14d   :  { %v1385_v20 = vadd.f32 %v1384_v9, %v1355_v17 }
 0x14f   :  { %v1415_v0 = vadd.f32 %v1414_v43, %v1385_v20  ;;  %v1683_v43 = vadd.s32 8, %v1682_v61 }
 0x151   :  { %v1447_v15 = vpop.f32.mrf.mxu0  ;;  %vm1687_vm2 = vcmp.eq.s32.totalorder %v1683_v43, %v1685_v62  ;;  %vm1708_vm9 = vcmp.lt.s32.totalorder %v1683_v43, 12 }
 0x152   :  { %v1420_v13 = vpop.f32.mrf.mxu3  ;;  %v1358_v14 = vpop.f32.mrf.mxu1  ;;  %v1448_v27 = vadd.f32 %v1447_v15, %v1415_v0 }
 0x153   :  { %v1389_v18 = vpop.f32.mrf.mxu2  ;;  %v1359_v25 = vadd.f32 %v1358_v14, %v1324_v21 }
 0x155   :  { %v1390_v28 = vadd.f32 %v1389_v18, %v1359_v25 }
 0x157   :  { %v1421_v33 = vadd.f32 %v1420_v13, %v1390_v28 }
 0x159   :  { %v1451_v23 = vpop.f32.mrf.mxu0 }
 0x15a   :  { %v1544_v22 = vpop.f32.mrf.mxu3  ;;  %v1474_v24 = vpop.f32.mrf.mxu1  ;;  %v1452_v38 = vadd.f32 %v1451_v23, %v1421_v33 }
 0x15b   :  { %v1505_v26 = vpop.f32.mrf.mxu2  ;;  %v1475_v29 = vadd.f32 %v1474_v24, %v1448_v27 }
 0x15d   :  { %v1506_v34 = vadd.f32 %v1505_v26, %v1475_v29 }
 0x15f   :  { %v1545_v39 = vadd.f32 %v1544_v22, %v1506_v34 }
 0x161   :  { %v1574_v37 = vpop.f32.mrf.mxu0 }
 0x162   :  { %v1548_v30 = vpop.f32.mrf.mxu3  ;;  %v1478_v31 = vpop.f32.mrf.mxu1  ;;  %v1575_v41 = vadd.f32 %v1574_v37, %v1545_v39 }
 0x163   :  { %v1513_v36 = vpop.f32.mrf.mxu2  ;;  %v1479_v40 = vadd.f32 %v1478_v31, %v1452_v38  ;;  %v1892_v31 = vmov -0.125  }
 0x164   :  { %v1759_v33 = vsel %vm1737_vm10, 0.5, %v1892_v31  ;;  %v1758_v34 = vsel %vm1748_vm12, 0.083333336, %v1892_v31 }
 0x165   :  { %v1514_v44 = vadd.f32 %v1513_v36, %v1479_v40 }
 0x167   :  { %v1549_v32 = vadd.f32 %v1548_v30, %v1514_v44 }
 0x169   :  { %v1579_v52 = vpop.f32.mrf.mxu0 }
 0x16a   :  { %v1604_v42 = vpop.f32.mrf.mxu1  ;;  %v1664_v35 = vpop.f32.mrf.mxu3  ;;  %v1580_v56 = vadd.f32 %v1579_v52, %v1549_v32 }
 0x16b   :  { %v1605_v46 = vadd.f32 %v1604_v42, %v1575_v41  ;;  %v1637_v49 = vpop.f32.mrf.mxu2 }
 0x16d   :  { %v1638_v50 = vadd.f32 %v1637_v49, %v1605_v46 }
 0x16f   :  { %v1665_v51 = vadd.f32 %v1664_v35, %v1638_v50 }
 0x171   :  { %v1671_v48 = vadd.f32 %v1665_v51, %v149_v54 }
 0x172   :  { %v1610_v57 = vpop.f32.mrf.mxu1  ;;  %v1668_v60 = vpop.f32.mrf.mxu3 }
 0x173   :  { %1674 = vst.msk [vmem:[#allocation3] sm:$0xff] %vm60_vm0, %v1671_v48  ;;  %v1611_v58 = vadd.f32 %v1610_v57, %v1580_v56  ;;  %v1641_v59 = vpop.f32.mrf.mxu2 }
 0x175   :  { %v1642_v45 = vadd.f32 %v1641_v59, %v1611_v58 }
 0x177   :  { %v1669_v53 = vadd.f32 %v1668_v60, %v1642_v45 }
 0x179   :  { %v1672_v1 = vadd.f32 %v1669_v53, %v150_v63 }
 0x17a   :  { %v1679_v2 = vld [vmem:[#allocation3] sm:$0xff] }
 0x17b   :  { %1675 = vst.msk [vmem:[#allocation3 + $0x8] sm:$0xff] %vm60_vm0, %v1672_v1  ;;  %v1688_v3 = vsel %vm1686_vm1, %v1679_v2, 0.0  ;;  %v1723_v17 = vmul.f32 2.0, %v1679_v2 }
 0x17c   :  { %v1690_v4 = vsel %vm60_vm0, %v1688_v3, 0.0 }
 0x17d   :  { %1691 = vadd.xlane.f32.xlu0 %v1690_v4 }
 0x182   :  { %v1680_v5 = vld [vmem:[#allocation3 + $0x8] sm:$0xff] }
 0x183   :  { %v1689_v6 = vsel %vm1687_vm2, %v1680_v5, 0.0  ;;  %v1724_v24 = vmul.f32 2.0, %v1680_v5 }
 0x184   :  { %v1693_v7 = vsel %vm60_vm0, %v1689_v6, 0.0 }
 0x185   :  { %1694 = vadd.xlane.f32.xlu0 %v1693_v7  ;;  %v1696_v8 = vadd.f32 %v1693_v7, %v1690_v4 }
 0x187   :  { %v1697_v9 = vrot.slane %v1696_v8, 4 }
 0x189   :  { %v1698_v10 = vadd.f32 %v1697_v9, %v1696_v8 }
 0x18b   :  { %v1699_v11 = vrot.slane %v1698_v10, 2 }
 0x18d   :  { %v1700_v47 = vadd.f32 %v1699_v11, %v1698_v10 }
 0x18f   :  { %v1701_v12 = vrot.slane %v1700_v47, 1 }
 0x191   :  { %v1702_v13 = vadd.f32 %v1701_v12, %v1700_v47 }
 0x193   :  { %v1720_v16 = vsel %vm1717_vm8, %v1702_v13, 1e+30 }
 0x1f0   :  { %v1692_v14 = vpop.xlane.xlu0 %1691 }
 0x1f1   :  { %v1718_v15 = vsel %vm1703_vm7, %v1692_v14, 1e+30 }
 0x1f2   :  { %v1721_v18 = vadd.f32 %v1720_v16, %v1718_v15 }
 0x1f4   :  { %v1725_v19 = vsub.f32 %v1721_v18, %v1723_v17 }
 0x1f6   :  { %v1727_v20 = vsub.f32 0.0, %v1725_v19 }
 0x1f8   :  { %v1729_v21 = vmul.f32 0.25, %v1727_v20  ;;  %v1695_v22 = vpop.xlane.xlu0 %1694 }
 0x1f9   :  { %v1719_v23 = vsel %vm1708_vm9, %v1695_v22, 1e+30 }
 0x1fa   :  { %v1722_v0 = vadd.f32 %v1720_v16, %v1719_v23  ;;  %v1731_v25 = vmul.f32 1.442695, %v1729_v21 }
 0x1fc   :  { %v1726_v26 = vsub.f32 %v1722_v0, %v1724_v24  ;;  %1806 = vpow2.f32 %v1731_v25 }
 0x1fe   :  { %v1728_v27 = vsub.f32 0.0, %v1726_v26 }
 0x200   :  { %v1730_v28 = vmul.f32 0.25, %v1728_v27 }
 0x202   :  { %v1733_v29 = vmul.f32 1.442695, %v1730_v28  ;;  %v1807_v30 = vpop.eup %1806 }
 0x203   :  { %v1761_v36 = vmul.f32 %v1807_v30, %v1759_v33 }
 0x204   :  { %1808 = vpow2.f32 %v1733_v29 }
 0x205   :  { %v1763_v39 = vsel %vm60_vm0, %v1761_v36, 0.0 }
 0x20a   :  { %v1809_v37 = vpop.eup %1808 }
 0x20b   :  { %v1762_v38 = vmul.f32 %v1809_v37, %v1758_v34 }
 0x20d   :  { %v1764_v40 = vsel %vm60_vm0, %v1762_v38, 0.0 }
 0x20e   :  { %v1765_v41 = vadd.f32 %v1764_v40, %v1763_v39 }
 0x210   :  { %1766 = vadd.xlane.f32.xlu1 %v1765_v41 }
 0x283   :  { %v1767_v42 = vpop.xlane.xlu1 %1766 }
 0x284   :  { %v1768_v35 = vrot.slane %v1767_v42, 4 }
 0x286   :  { %v1769_v44 = vadd.f32 %v1768_v35, %v1767_v42 }
 0x288   :  { %v1770_v46 = vrot.slane %v1769_v44, 2 }
 0x28a   :  { %v1771_v49 = vadd.f32 %v1770_v46, %v1769_v44 }
 0x28c   :  { %v1772_v50 = vrot.slane %v1771_v49, 1 }
 0x28e   :  { %v1773_v52 = vadd.f32 %v1772_v50, %v1771_v49 }
 0x290   :  { %1798 = vpush %v1773_v52 }
 0x2c1   :  { %s1799_s22 = spop %1798 }
 0x2c2   :  { %s1797_s23 = sadd.f32 -1.3333334, %s1799_s22 }
 0x2c4   :  { %v1776_v54 = vstv %s1797_s23 }
 0x2c5   :  { %1778 = vst.msk [vmem:[#allocation9] sm:$0x1] %vm1777_vm13, %v1776_v54 }
 0x2c6   :  { %1789 = dma.vmem_to_hbm [thread:$0]  %s1785_s1, 16, %s1787_s21, [#allocation6]  }
 0x2c7   :  { %1886 = dma.done.wait [#allocation6], 16  }
 0x2c8   :  { %1887 = vsyncadd [#allocation6], 4294967280 }
 0x2c9   :  { %1794 = vsyncpa [#allocation5], 1 }
 0x2ca   :  { %1795 = vsyncpa [#allocation8], 1 }
 0x2cb   :  { %1796 = vsyncpa [#allocation6], 1 }

</bundles_post_ra>
